<compile_context>
chip_gen: v6e
topology: v6e:2x2x1
jax: 0.10.0
libtpu: 0.0.40
codegen_flags: <defaults>
</compile_context>

<pallas_src>
import jax
import jax.numpy as jnp
from jax.experimental import pallas as pl
from jax.experimental.pallas import tpu as pltpu

# ---- model dimensions (args of VLSTMModel) ----
T = 8            # seq_length
N = 8            # numNodes == len(look_up) == maxNumPeds
D_IN = 2         # input_size (x, y position)
D_EMB = 16       # embedding_size
D_H = 32         # rnn_size
D_OUT = 5        # output_size
D_OUT_PAD = 128  # lane-dense padded output width (kernel-internal)


def vlstm_kernel(frames_ref, mask_ref,
                 w_emb_ref, b_emb_ref,
                 w_ih_ref, w_hh_ref, b_gates_ref,
                 w_out_ref, b_out_ref,
                 h0_ref, c0_ref,
                 out_ref, h_out_ref, c_out_ref):
    # ---- everything input-only is computed ONCE, off the serial chain ----
    frames = frames_ref[...]                                  # (T*N, D_IN)
    mask_all = mask_ref[...]                                  # (T*N, 1)
    present_h = jnp.broadcast_to(mask_all > 0.5, (T * N, D_H))  # one broadcast

    # input_embedding_layer + ReLU, batched over all T frames (dropout == id).
    emb_all = jnp.maximum(
        jnp.dot(frames, w_emb_ref[...],
                preferred_element_type=jnp.float32) + b_emb_ref[...], 0.0)
    # Input half of the LSTM gates (W_ih) + fused bias, batched: (T*N, 4*D_H).
    gates_x_all = jnp.dot(emb_all, w_ih_ref[...],
                          preferred_element_type=jnp.float32) + b_gates_ref[...]

    w_hh = w_hh_ref[...]                                      # (D_H, 4*D_H)

    # ---- unrolled recurrence: one (N, D_H)@(D_H, 4*D_H) MXU op per step ----
    h = h0_ref[...]                                           # (N, D_H)
    c = c0_ref[...]                                           # (N, D_H)
    h_list = []
    for t in range(T):
        gx = gates_x_all[t * N:(t + 1) * N, :]                # static vreg pick
        gates = gx + jnp.dot(h, w_hh, preferred_element_type=jnp.float32)

        # Full 128-lane nonlinearities (2 EUP pushes), then static lane slices.
        sig = jax.nn.sigmoid(gates)                           # (N, 4*D_H)
        tnh = jnp.tanh(gates)                                 # (N, 4*D_H)
        i_g = sig[:, 0 * D_H:1 * D_H]
        f_g = sig[:, 1 * D_H:2 * D_H]
        g_g = tnh[:, 2 * D_H:3 * D_H]
        o_g = sig[:, 3 * D_H:4 * D_H]

        c_new = f_g * c + i_g * g_g
        h_new = o_g * jnp.tanh(c_new)
        h_list.append(h_new)                                  # stays in registers

        prs = present_h[t * N:(t + 1) * N, :]                 # static slice
        h = jnp.where(prs, h_new, h)                          # absent peds keep state
        c = jnp.where(prs, c_new, c)

    # ---- batched, lane-dense output projection (off the serial chain) ----
    h_hist = jnp.concatenate(h_list, axis=0)                  # (T*N, D_H)
    out_all = jnp.dot(h_hist, w_out_ref[...],
                      preferred_element_type=jnp.float32) + b_out_ref[...]
    out_ref[...] = jnp.where(mask_all > 0.5, out_all, 0.0)    # absent -> zero rows

    h_out_ref[...] = h
    c_out_ref[...] = c


def vlstm_forward(frames, mask, params, h0, c0):
    w_emb, b_emb, w_ih, b_ih, w_hh, b_hh, w_out, b_out = params
    # Host-side fusion of the two gate biases.
    b_gates = b_ih + b_hh                                     # (1, 4*D_H)
    # Lane-dense output: zero-pad projection to 128 output lanes.
    w_out_pad = jnp.zeros((D_H, D_OUT_PAD), jnp.float32).at[:, :D_OUT].set(w_out)
    b_out_pad = jnp.zeros((1, D_OUT_PAD), jnp.float32).at[:, :D_OUT].set(b_out)

    frames_flat = frames.reshape(T * N, D_IN)                 # frame-major rows
    mask2d = mask.reshape(T * N, 1)

    vmem = pl.BlockSpec(memory_space=pltpu.MemorySpace.VMEM)
    out_pad, h_fin, c_fin = pl.pallas_call(
        vlstm_kernel,
        out_shape=(
            jax.ShapeDtypeStruct((T * N, D_OUT_PAD), jnp.float32),  # outputs (padded)
            jax.ShapeDtypeStruct((N, D_H), jnp.float32),            # final hidden
            jax.ShapeDtypeStruct((N, D_H), jnp.float32),            # final cell
        ),
        in_specs=[vmem] * 11,
        out_specs=(vmem, vmem, vmem),
        input_output_aliases={9: 1, 10: 2},   # h0 -> h_out, c0 -> c_out
    )(frames_flat, mask2d, w_emb, b_emb, w_ih, w_hh, b_gates,
      w_out_pad, b_out_pad, h0, c0)

    return out_pad[:, :D_OUT].reshape(T, N, D_OUT), h_fin, c_fin


vlstm_forward_jit = jax.jit(vlstm_forward)


def reference_forward(frames, mask, params, h0, c0):
    """Pure-JAX reference of the same forward pass (for correctness check)."""
    w_emb, b_emb, w_ih, b_ih, w_hh, b_hh, w_out, b_out = params
    h, c = h0, c0
    outs = []
    for t in range(T):
        x = frames[t]
        m = mask[t] > 0.5
        emb = jnp.maximum(x @ w_emb + b_emb, 0.0)
        gates = emb @ w_ih + b_ih + h @ w_hh + b_hh
        i_g = jax.nn.sigmoid(gates[:, 0 * D_H:1 * D_H])
        f_g = jax.nn.sigmoid(gates[:, 1 * D_H:2 * D_H])
        g_g = jnp.tanh(gates[:, 2 * D_H:3 * D_H])
        o_g = jax.nn.sigmoid(gates[:, 3 * D_H:4 * D_H])
        c_new = f_g * c + i_g * g_g
        h_new = o_g * jnp.tanh(c_new)
        out = h_new @ w_out + b_out
        outs.append(jnp.where(m, out, 0.0))
        h = jnp.where(m, h_new, h)
        c = jnp.where(m, c_new, c)
    return jnp.stack(outs), h, c


def init_params(key):
    ks = jax.random.split(key, 8)
    scale = 0.1
    w_emb = scale * jax.random.normal(ks[0], (D_IN, D_EMB), jnp.float32)
    b_emb = scale * jax.random.normal(ks[1], (1, D_EMB), jnp.float32)
    w_ih = scale * jax.random.normal(ks[2], (D_EMB, 4 * D_H), jnp.float32)
    b_ih = scale * jax.random.normal(ks[3], (1, 4 * D_H), jnp.float32)
    w_hh = scale * jax.random.normal(ks[4], (D_H, 4 * D_H), jnp.float32)
    b_hh = scale * jax.random.normal(ks[5], (1, 4 * D_H), jnp.float32)
    w_out = scale * jax.random.normal(ks[6], (D_H, D_OUT), jnp.float32)
    b_out = scale * jax.random.normal(ks[7], (1, D_OUT), jnp.float32)
    return (w_emb, b_emb, w_ih, b_ih, w_hh, b_hh, w_out, b_out)


if __name__ == "__main__":
    key = jax.random.PRNGKey(0)
    k_params, k_frames, k_mask, k_h, k_c = jax.random.split(key, 5)

    params = init_params(k_params)
    frames = jax.random.normal(k_frames, (T, N, D_IN), jnp.float32)        # input_data
    # PedsList per frame as presence mask (1.0 = ped present in that frame)
    mask = (jax.random.uniform(k_mask, (T, N, 1)) > 0.3).astype(jnp.float32)
    h0 = 0.1 * jax.random.normal(k_h, (N, D_H), jnp.float32)               # hidden_states
    c0 = 0.1 * jax.random.normal(k_c, (N, D_H), jnp.float32)               # cell_states

    # Reference first (kernel aliases h0/c0 into its state outputs).
    ref_outs, ref_h, ref_c = reference_forward(frames, mask, params, h0, c0)
    jax.block_until_ready((ref_outs, ref_h, ref_c))

    outs, h_fin, c_fin = vlstm_forward_jit(frames, mask, params, h0, c0)
    jax.block_until_ready((outs, h_fin, c_fin))

    assert jnp.allclose(outs, ref_outs, rtol=1e-3, atol=1e-3)
    assert jnp.allclose(h_fin, ref_h, rtol=1e-3, atol=1e-3)
    assert jnp.allclose(c_fin, ref_c, rtol=1e-3, atol=1e-3)

    print("KERNEL_OK")
</pallas_src>

<mosaic_0001>
module attributes {stable_mosaic.version = 11 : i64} {
  func.func @vlstm_kernel(%arg0: memref<64x2xf32, #tpu.memory_space<vmem>>, %arg1: memref<64x1xf32, #tpu.memory_space<vmem>>, %arg2: memref<2x16xf32, #tpu.memory_space<vmem>>, %arg3: memref<1x16xf32, #tpu.memory_space<vmem>>, %arg4: memref<16x128xf32, #tpu.memory_space<vmem>>, %arg5: memref<32x128xf32, #tpu.memory_space<vmem>>, %arg6: memref<1x128xf32, #tpu.memory_space<vmem>>, %arg7: memref<32x128xf32, #tpu.memory_space<vmem>>, %arg8: memref<1x128xf32, #tpu.memory_space<vmem>>, %arg9: memref<8x32xf32, #tpu.memory_space<vmem>>, %arg10: memref<8x32xf32, #tpu.memory_space<vmem>>, %arg11: memref<64x128xf32, #tpu.memory_space<vmem>>, %arg12: memref<8x32xf32, #tpu.memory_space<vmem>>, %arg13: memref<8x32xf32, #tpu.memory_space<vmem>>) attributes {dimension_semantics = [], scalar_prefetch = 0 : i64, scratch_operands = 0 : i64, tpu.core_type = #tpu.core_type<tc>} {
    %c0 = arith.constant 0 : index
    %c0_0 = arith.constant 0 : index
    %0 = vector.load %arg0[%c0, %c0_0] : memref<64x2xf32, #tpu.memory_space<vmem>>, vector<64x2xf32>
    %c0_1 = arith.constant 0 : index
    %c0_2 = arith.constant 0 : index
    %1 = vector.load %arg1[%c0_1, %c0_2] : memref<64x1xf32, #tpu.memory_space<vmem>>, vector<64x1xf32>
    %cst = arith.constant 5.000000e-01 : f32
    %2 = vector.broadcast %cst : f32 to vector<64x1xf32>
    %3 = arith.cmpf ogt, %1, %2 : vector<64x1xf32>
    %4 = vector.shape_cast %3 : vector<64x1xi1> to vector<64x1xi1>
    %5 = vector.broadcast %4 : vector<64x1xi1> to vector<64x32xi1>
    %c0_3 = arith.constant 0 : index
    %c0_4 = arith.constant 0 : index
    %6 = vector.load %arg2[%c0_3, %c0_4] : memref<2x16xf32, #tpu.memory_space<vmem>>, vector<2x16xf32>
    %cst_5 = arith.constant dense<0.000000e+00> : vector<64x16xf32>
    %7 = tpu.matmul %0, %6, %cst_5 {dimension_numbers = #tpu.dot_dimension_numbers<[1], [0], [0], [1], [0, 0, 1, 1], [], []>} : vector<64x2xf32>, vector<2x16xf32>, vector<64x16xf32> -> vector<64x16xf32>
    %c0_6 = arith.constant 0 : index
    %c0_7 = arith.constant 0 : index
    %8 = vector.load %arg3[%c0_6, %c0_7] : memref<1x16xf32, #tpu.memory_space<vmem>>, vector<1x16xf32>
    %9 = vector.broadcast %8 : vector<1x16xf32> to vector<64x16xf32>
    %10 = arith.addf %7, %9 : vector<64x16xf32>
    %cst_8 = arith.constant 0.000000e+00 : f32
    %11 = vector.broadcast %cst_8 : f32 to vector<64x16xf32>
    %12 = arith.maximumf %10, %11 : vector<64x16xf32>
    %c0_9 = arith.constant 0 : index
    %c0_10 = arith.constant 0 : index
    %13 = vector.load %arg4[%c0_9, %c0_10] : memref<16x128xf32, #tpu.memory_space<vmem>>, vector<16x128xf32>
    %cst_11 = arith.constant dense<0.000000e+00> : vector<64x128xf32>
    %14 = tpu.matmul %12, %13, %cst_11 {dimension_numbers = #tpu.dot_dimension_numbers<[1], [0], [0], [1], [0, 0, 1, 1], [], []>} : vector<64x16xf32>, vector<16x128xf32>, vector<64x128xf32> -> vector<64x128xf32>
    %c0_12 = arith.constant 0 : index
    %c0_13 = arith.constant 0 : index
    %15 = vector.load %arg6[%c0_12, %c0_13] : memref<1x128xf32, #tpu.memory_space<vmem>>, vector<1x128xf32>
    %16 = vector.broadcast %15 : vector<1x128xf32> to vector<64x128xf32>
    %17 = arith.addf %14, %16 : vector<64x128xf32>
    %c0_14 = arith.constant 0 : index
    %c0_15 = arith.constant 0 : index
    %18 = vector.load %arg5[%c0_14, %c0_15] : memref<32x128xf32, #tpu.memory_space<vmem>>, vector<32x128xf32>
    %c0_16 = arith.constant 0 : index
    %c0_17 = arith.constant 0 : index
    %19 = vector.load %arg9[%c0_16, %c0_17] : memref<8x32xf32, #tpu.memory_space<vmem>>, vector<8x32xf32>
    %c0_18 = arith.constant 0 : index
    %c0_19 = arith.constant 0 : index
    %20 = vector.load %arg10[%c0_18, %c0_19] : memref<8x32xf32, #tpu.memory_space<vmem>>, vector<8x32xf32>
    %21 = vector.extract_strided_slice %17 {offsets = [0, 0], sizes = [8, 128], strides = [1, 1]} : vector<64x128xf32> to vector<8x128xf32>
    %cst_20 = arith.constant dense<0.000000e+00> : vector<8x128xf32>
    %22 = tpu.matmul %19, %18, %cst_20 {dimension_numbers = #tpu.dot_dimension_numbers<[1], [0], [0], [1], [0, 0, 1, 1], [], []>} : vector<8x32xf32>, vector<32x128xf32>, vector<8x128xf32> -> vector<8x128xf32>
    %23 = arith.addf %21, %22 : vector<8x128xf32>
    %24 = arith.negf %23 : vector<8x128xf32>
    %25 = math.exp %24 : vector<8x128xf32>
    %cst_21 = arith.constant 1.000000e+00 : f32
    %26 = vector.broadcast %cst_21 : f32 to vector<8x128xf32>
    %27 = arith.addf %26, %25 : vector<8x128xf32>
    %28 = arith.divf %26, %27 : vector<8x128xf32>
    %29 = math.tanh %23 : vector<8x128xf32>
    %30 = vector.extract_strided_slice %28 {offsets = [0, 0], sizes = [8, 32], strides = [1, 1]} : vector<8x128xf32> to vector<8x32xf32>
    %31 = vector.extract_strided_slice %28 {offsets = [0, 32], sizes = [8, 32], strides = [1, 1]} : vector<8x128xf32> to vector<8x32xf32>
    %32 = vector.extract_strided_slice %29 {offsets = [0, 64], sizes = [8, 32], strides = [1, 1]} : vector<8x128xf32> to vector<8x32xf32>
    %33 = vector.extract_strided_slice %28 {offsets = [0, 96], sizes = [8, 32], strides = [1, 1]} : vector<8x128xf32> to vector<8x32xf32>
    %34 = arith.mulf %31, %20 : vector<8x32xf32>
    %35 = arith.mulf %30, %32 : vector<8x32xf32>
    %36 = arith.addf %34, %35 : vector<8x32xf32>
    %37 = math.tanh %36 : vector<8x32xf32>
    %38 = arith.mulf %33, %37 : vector<8x32xf32>
    %39 = vector.extract_strided_slice %5 {offsets = [0, 0], sizes = [8, 32], strides = [1, 1]} : vector<64x32xi1> to vector<8x32xi1>
    %40 = arith.select %39, %38, %19 : vector<8x32xi1>, vector<8x32xf32>
    %41 = arith.select %39, %36, %20 : vector<8x32xi1>, vector<8x32xf32>
    %42 = vector.extract_strided_slice %17 {offsets = [8, 0], sizes = [8, 128], strides = [1, 1]} : vector<64x128xf32> to vector<8x128xf32>
    %cst_22 = arith.constant dense<0.000000e+00> : vector<8x128xf32>
    %43 = tpu.matmul %40, %18, %cst_22 {dimension_numbers = #tpu.dot_dimension_numbers<[1], [0], [0], [1], [0, 0, 1, 1], [], []>} : vector<8x32xf32>, vector<32x128xf32>, vector<8x128xf32> -> vector<8x128xf32>
    %44 = arith.addf %42, %43 : vector<8x128xf32>
    %45 = arith.negf %44 : vector<8x128xf32>
    %46 = math.exp %45 : vector<8x128xf32>
    %cst_23 = arith.constant 1.000000e+00 : f32
    %47 = vector.broadcast %cst_23 : f32 to vector<8x128xf32>
    %48 = arith.addf %47, %46 : vector<8x128xf32>
    %49 = arith.divf %47, %48 : vector<8x128xf32>
    %50 = math.tanh %44 : vector<8x128xf32>
    %51 = vector.extract_strided_slice %49 {offsets = [0, 0], sizes = [8, 32], strides = [1, 1]} : vector<8x128xf32> to vector<8x32xf32>
    %52 = vector.extract_strided_slice %49 {offsets = [0, 32], sizes = [8, 32], strides = [1, 1]} : vector<8x128xf32> to vector<8x32xf32>
    %53 = vector.extract_strided_slice %50 {offsets = [0, 64], sizes = [8, 32], strides = [1, 1]} : vector<8x128xf32> to vector<8x32xf32>
    %54 = vector.extract_strided_slice %49 {offsets = [0, 96], sizes = [8, 32], strides = [1, 1]} : vector<8x128xf32> to vector<8x32xf32>
    %55 = arith.mulf %52, %41 : vector<8x32xf32>
    %56 = arith.mulf %51, %53 : vector<8x32xf32>
    %57 = arith.addf %55, %56 : vector<8x32xf32>
    %58 = math.tanh %57 : vector<8x32xf32>
    %59 = arith.mulf %54, %58 : vector<8x32xf32>
    %60 = vector.extract_strided_slice %5 {offsets = [8, 0], sizes = [8, 32], strides = [1, 1]} : vector<64x32xi1> to vector<8x32xi1>
    %61 = arith.select %60, %59, %40 : vector<8x32xi1>, vector<8x32xf32>
    %62 = arith.select %60, %57, %41 : vector<8x32xi1>, vector<8x32xf32>
    %63 = vector.extract_strided_slice %17 {offsets = [16, 0], sizes = [8, 128], strides = [1, 1]} : vector<64x128xf32> to vector<8x128xf32>
    %cst_24 = arith.constant dense<0.000000e+00> : vector<8x128xf32>
    %64 = tpu.matmul %61, %18, %cst_24 {dimension_numbers = #tpu.dot_dimension_numbers<[1], [0], [0], [1], [0, 0, 1, 1], [], []>} : vector<8x32xf32>, vector<32x128xf32>, vector<8x128xf32> -> vector<8x128xf32>
    %65 = arith.addf %63, %64 : vector<8x128xf32>
    %66 = arith.negf %65 : vector<8x128xf32>
    %67 = math.exp %66 : vector<8x128xf32>
    %cst_25 = arith.constant 1.000000e+00 : f32
    %68 = vector.broadcast %cst_25 : f32 to vector<8x128xf32>
    %69 = arith.addf %68, %67 : vector<8x128xf32>
    %70 = arith.divf %68, %69 : vector<8x128xf32>
    %71 = math.tanh %65 : vector<8x128xf32>
    %72 = vector.extract_strided_slice %70 {offsets = [0, 0], sizes = [8, 32], strides = [1, 1]} : vector<8x128xf32> to vector<8x32xf32>
    %73 = vector.extract_strided_slice %70 {offsets = [0, 32], sizes = [8, 32], strides = [1, 1]} : vector<8x128xf32> to vector<8x32xf32>
    %74 = vector.extract_strided_slice %71 {offsets = [0, 64], sizes = [8, 32], strides = [1, 1]} : vector<8x128xf32> to vector<8x32xf32>
    %75 = vector.extract_strided_slice %70 {offsets = [0, 96], sizes = [8, 32], strides = [1, 1]} : vector<8x128xf32> to vector<8x32xf32>
    %76 = arith.mulf %73, %62 : vector<8x32xf32>
    %77 = arith.mulf %72, %74 : vector<8x32xf32>
    %78 = arith.addf %76, %77 : vector<8x32xf32>
    %79 = math.tanh %78 : vector<8x32xf32>
    %80 = arith.mulf %75, %79 : vector<8x32xf32>
    %81 = vector.extract_strided_slice %5 {offsets = [16, 0], sizes = [8, 32], strides = [1, 1]} : vector<64x32xi1> to vector<8x32xi1>
    %82 = arith.select %81, %80, %61 : vector<8x32xi1>, vector<8x32xf32>
    %83 = arith.select %81, %78, %62 : vector<8x32xi1>, vector<8x32xf32>
    %84 = vector.extract_strided_slice %17 {offsets = [24, 0], sizes = [8, 128], strides = [1, 1]} : vector<64x128xf32> to vector<8x128xf32>
    %cst_26 = arith.constant dense<0.000000e+00> : vector<8x128xf32>
    %85 = tpu.matmul %82, %18, %cst_26 {dimension_numbers = #tpu.dot_dimension_numbers<[1], [0], [0], [1], [0, 0, 1, 1], [], []>} : vector<8x32xf32>, vector<32x128xf32>, vector<8x128xf32> -> vector<8x128xf32>
    %86 = arith.addf %84, %85 : vector<8x128xf32>
    %87 = arith.negf %86 : vector<8x128xf32>
    %88 = math.exp %87 : vector<8x128xf32>
    %cst_27 = arith.constant 1.000000e+00 : f32
    %89 = vector.broadcast %cst_27 : f32 to vector<8x128xf32>
    %90 = arith.addf %89, %88 : vector<8x128xf32>
    %91 = arith.divf %89, %90 : vector<8x128xf32>
    %92 = math.tanh %86 : vector<8x128xf32>
    %93 = vector.extract_strided_slice %91 {offsets = [0, 0], sizes = [8, 32], strides = [1, 1]} : vector<8x128xf32> to vector<8x32xf32>
    %94 = vector.extract_strided_slice %91 {offsets = [0, 32], sizes = [8, 32], strides = [1, 1]} : vector<8x128xf32> to vector<8x32xf32>
    %95 = vector.extract_strided_slice %92 {offsets = [0, 64], sizes = [8, 32], strides = [1, 1]} : vector<8x128xf32> to vector<8x32xf32>
    %96 = vector.extract_strided_slice %91 {offsets = [0, 96], sizes = [8, 32], strides = [1, 1]} : vector<8x128xf32> to vector<8x32xf32>
    %97 = arith.mulf %94, %83 : vector<8x32xf32>
    %98 = arith.mulf %93, %95 : vector<8x32xf32>
    %99 = arith.addf %97, %98 : vector<8x32xf32>
    %100 = math.tanh %99 : vector<8x32xf32>
    %101 = arith.mulf %96, %100 : vector<8x32xf32>
    %102 = vector.extract_strided_slice %5 {offsets = [24, 0], sizes = [8, 32], strides = [1, 1]} : vector<64x32xi1> to vector<8x32xi1>
    %103 = arith.select %102, %101, %82 : vector<8x32xi1>, vector<8x32xf32>
    %104 = arith.select %102, %99, %83 : vector<8x32xi1>, vector<8x32xf32>
    %105 = vector.extract_strided_slice %17 {offsets = [32, 0], sizes = [8, 128], strides = [1, 1]} : vector<64x128xf32> to vector<8x128xf32>
    %cst_28 = arith.constant dense<0.000000e+00> : vector<8x128xf32>
    %106 = tpu.matmul %103, %18, %cst_28 {dimension_numbers = #tpu.dot_dimension_numbers<[1], [0], [0], [1], [0, 0, 1, 1], [], []>} : vector<8x32xf32>, vector<32x128xf32>, vector<8x128xf32> -> vector<8x128xf32>
    %107 = arith.addf %105, %106 : vector<8x128xf32>
    %108 = arith.negf %107 : vector<8x128xf32>
    %109 = math.exp %108 : vector<8x128xf32>
    %cst_29 = arith.constant 1.000000e+00 : f32
    %110 = vector.broadcast %cst_29 : f32 to vector<8x128xf32>
    %111 = arith.addf %110, %109 : vector<8x128xf32>
    %112 = arith.divf %110, %111 : vector<8x128xf32>
    %113 = math.tanh %107 : vector<8x128xf32>
    %114 = vector.extract_strided_slice %112 {offsets = [0, 0], sizes = [8, 32], strides = [1, 1]} : vector<8x128xf32> to vector<8x32xf32>
    %115 = vector.extract_strided_slice %112 {offsets = [0, 32], sizes = [8, 32], strides = [1, 1]} : vector<8x128xf32> to vector<8x32xf32>
    %116 = vector.extract_strided_slice %113 {offsets = [0, 64], sizes = [8, 32], strides = [1, 1]} : vector<8x128xf32> to vector<8x32xf32>
    %117 = vector.extract_strided_slice %112 {offsets = [0, 96], sizes = [8, 32], strides = [1, 1]} : vector<8x128xf32> to vector<8x32xf32>
    %118 = arith.mulf %115, %104 : vector<8x32xf32>
    %119 = arith.mulf %114, %116 : vector<8x32xf32>
    %120 = arith.addf %118, %119 : vector<8x32xf32>
    %121 = math.tanh %120 : vector<8x32xf32>
    %122 = arith.mulf %117, %121 : vector<8x32xf32>
    %123 = vector.extract_strided_slice %5 {offsets = [32, 0], sizes = [8, 32], strides = [1, 1]} : vector<64x32xi1> to vector<8x32xi1>
    %124 = arith.select %123, %122, %103 : vector<8x32xi1>, vector<8x32xf32>
    %125 = arith.select %123, %120, %104 : vector<8x32xi1>, vector<8x32xf32>
    %126 = vector.extract_strided_slice %17 {offsets = [40, 0], sizes = [8, 128], strides = [1, 1]} : vector<64x128xf32> to vector<8x128xf32>
    %cst_30 = arith.constant dense<0.000000e+00> : vector<8x128xf32>
    %127 = tpu.matmul %124, %18, %cst_30 {dimension_numbers = #tpu.dot_dimension_numbers<[1], [0], [0], [1], [0, 0, 1, 1], [], []>} : vector<8x32xf32>, vector<32x128xf32>, vector<8x128xf32> -> vector<8x128xf32>
    %128 = arith.addf %126, %127 : vector<8x128xf32>
    %129 = arith.negf %128 : vector<8x128xf32>
    %130 = math.exp %129 : vector<8x128xf32>
    %cst_31 = arith.constant 1.000000e+00 : f32
    %131 = vector.broadcast %cst_31 : f32 to vector<8x128xf32>
    %132 = arith.addf %131, %130 : vector<8x128xf32>
    %133 = arith.divf %131, %132 : vector<8x128xf32>
    %134 = math.tanh %128 : vector<8x128xf32>
    %135 = vector.extract_strided_slice %133 {offsets = [0, 0], sizes = [8, 32], strides = [1, 1]} : vector<8x128xf32> to vector<8x32xf32>
    %136 = vector.extract_strided_slice %133 {offsets = [0, 32], sizes = [8, 32], strides = [1, 1]} : vector<8x128xf32> to vector<8x32xf32>
    %137 = vector.extract_strided_slice %134 {offsets = [0, 64], sizes = [8, 32], strides = [1, 1]} : vector<8x128xf32> to vector<8x32xf32>
    %138 = vector.extract_strided_slice %133 {offsets = [0, 96], sizes = [8, 32], strides = [1, 1]} : vector<8x128xf32> to vector<8x32xf32>
    %139 = arith.mulf %136, %125 : vector<8x32xf32>
    %140 = arith.mulf %135, %137 : vector<8x32xf32>
    %141 = arith.addf %139, %140 : vector<8x32xf32>
    %142 = math.tanh %141 : vector<8x32xf32>
    %143 = arith.mulf %138, %142 : vector<8x32xf32>
    %144 = vector.extract_strided_slice %5 {offsets = [40, 0], sizes = [8, 32], strides = [1, 1]} : vector<64x32xi1> to vector<8x32xi1>
    %145 = arith.select %144, %143, %124 : vector<8x32xi1>, vector<8x32xf32>
    %146 = arith.select %144, %141, %125 : vector<8x32xi1>, vector<8x32xf32>
    %147 = vector.extract_strided_slice %17 {offsets = [48, 0], sizes = [8, 128], strides = [1, 1]} : vector<64x128xf32> to vector<8x128xf32>
    %cst_32 = arith.constant dense<0.000000e+00> : vector<8x128xf32>
    %148 = tpu.matmul %145, %18, %cst_32 {dimension_numbers = #tpu.dot_dimension_numbers<[1], [0], [0], [1], [0, 0, 1, 1], [], []>} : vector<8x32xf32>, vector<32x128xf32>, vector<8x128xf32> -> vector<8x128xf32>
    %149 = arith.addf %147, %148 : vector<8x128xf32>
    %150 = arith.negf %149 : vector<8x128xf32>
    %151 = math.exp %150 : vector<8x128xf32>
    %cst_33 = arith.constant 1.000000e+00 : f32
    %152 = vector.broadcast %cst_33 : f32 to vector<8x128xf32>
    %153 = arith.addf %152, %151 : vector<8x128xf32>
    %154 = arith.divf %152, %153 : vector<8x128xf32>
    %155 = math.tanh %149 : vector<8x128xf32>
    %156 = vector.extract_strided_slice %154 {offsets = [0, 0], sizes = [8, 32], strides = [1, 1]} : vector<8x128xf32> to vector<8x32xf32>
    %157 = vector.extract_strided_slice %154 {offsets = [0, 32], sizes = [8, 32], strides = [1, 1]} : vector<8x128xf32> to vector<8x32xf32>
    %158 = vector.extract_strided_slice %155 {offsets = [0, 64], sizes = [8, 32], strides = [1, 1]} : vector<8x128xf32> to vector<8x32xf32>
    %159 = vector.extract_strided_slice %154 {offsets = [0, 96], sizes = [8, 32], strides = [1, 1]} : vector<8x128xf32> to vector<8x32xf32>
    %160 = arith.mulf %157, %146 : vector<8x32xf32>
    %161 = arith.mulf %156, %158 : vector<8x32xf32>
    %162 = arith.addf %160, %161 : vector<8x32xf32>
    %163 = math.tanh %162 : vector<8x32xf32>
    %164 = arith.mulf %159, %163 : vector<8x32xf32>
    %165 = vector.extract_strided_slice %5 {offsets = [48, 0], sizes = [8, 32], strides = [1, 1]} : vector<64x32xi1> to vector<8x32xi1>
    %166 = arith.select %165, %164, %145 : vector<8x32xi1>, vector<8x32xf32>
    %167 = arith.select %165, %162, %146 : vector<8x32xi1>, vector<8x32xf32>
    %168 = vector.extract_strided_slice %17 {offsets = [56, 0], sizes = [8, 128], strides = [1, 1]} : vector<64x128xf32> to vector<8x128xf32>
    %cst_34 = arith.constant dense<0.000000e+00> : vector<8x128xf32>
    %169 = tpu.matmul %166, %18, %cst_34 {dimension_numbers = #tpu.dot_dimension_numbers<[1], [0], [0], [1], [0, 0, 1, 1], [], []>} : vector<8x32xf32>, vector<32x128xf32>, vector<8x128xf32> -> vector<8x128xf32>
    %170 = arith.addf %168, %169 : vector<8x128xf32>
    %171 = arith.negf %170 : vector<8x128xf32>
    %172 = math.exp %171 : vector<8x128xf32>
    %cst_35 = arith.constant 1.000000e+00 : f32
    %173 = vector.broadcast %cst_35 : f32 to vector<8x128xf32>
    %174 = arith.addf %173, %172 : vector<8x128xf32>
    %175 = arith.divf %173, %174 : vector<8x128xf32>
    %176 = math.tanh %170 : vector<8x128xf32>
    %177 = vector.extract_strided_slice %175 {offsets = [0, 0], sizes = [8, 32], strides = [1, 1]} : vector<8x128xf32> to vector<8x32xf32>
    %178 = vector.extract_strided_slice %175 {offsets = [0, 32], sizes = [8, 32], strides = [1, 1]} : vector<8x128xf32> to vector<8x32xf32>
    %179 = vector.extract_strided_slice %176 {offsets = [0, 64], sizes = [8, 32], strides = [1, 1]} : vector<8x128xf32> to vector<8x32xf32>
    %180 = vector.extract_strided_slice %175 {offsets = [0, 96], sizes = [8, 32], strides = [1, 1]} : vector<8x128xf32> to vector<8x32xf32>
    %181 = arith.mulf %178, %167 : vector<8x32xf32>
    %182 = arith.mulf %177, %179 : vector<8x32xf32>
    %183 = arith.addf %181, %182 : vector<8x32xf32>
    %184 = math.tanh %183 : vector<8x32xf32>
    %185 = arith.mulf %180, %184 : vector<8x32xf32>
    %186 = vector.extract_strided_slice %5 {offsets = [56, 0], sizes = [8, 32], strides = [1, 1]} : vector<64x32xi1> to vector<8x32xi1>
    %187 = arith.select %186, %185, %166 : vector<8x32xi1>, vector<8x32xf32>
    %188 = arith.select %186, %183, %167 : vector<8x32xi1>, vector<8x32xf32>
    %189 = tpu.concatenate %38, %59, %80, %101, %122, %143, %164, %185 in 0 : vector<8x32xf32>, vector<8x32xf32>, vector<8x32xf32>, vector<8x32xf32>, vector<8x32xf32>, vector<8x32xf32>, vector<8x32xf32>, vector<8x32xf32> -> vector<64x32xf32>
    %c0_36 = arith.constant 0 : index
    %c0_37 = arith.constant 0 : index
    %190 = vector.load %arg7[%c0_36, %c0_37] : memref<32x128xf32, #tpu.memory_space<vmem>>, vector<32x128xf32>
    %cst_38 = arith.constant dense<0.000000e+00> : vector<64x128xf32>
    %191 = tpu.matmul %189, %190, %cst_38 {dimension_numbers = #tpu.dot_dimension_numbers<[1], [0], [0], [1], [0, 0, 1, 1], [], []>} : vector<64x32xf32>, vector<32x128xf32>, vector<64x128xf32> -> vector<64x128xf32>
    %c0_39 = arith.constant 0 : index
    %c0_40 = arith.constant 0 : index
    %192 = vector.load %arg8[%c0_39, %c0_40] : memref<1x128xf32, #tpu.memory_space<vmem>>, vector<1x128xf32>
    %193 = vector.broadcast %192 : vector<1x128xf32> to vector<64x128xf32>
    %194 = arith.addf %191, %193 : vector<64x128xf32>
    %cst_41 = arith.constant 5.000000e-01 : f32
    %195 = vector.broadcast %cst_41 : f32 to vector<64x1xf32>
    %196 = arith.cmpf ogt, %1, %195 : vector<64x1xf32>
    %cst_42 = arith.constant 0.000000e+00 : f32
    %197 = vector.shape_cast %196 : vector<64x1xi1> to vector<64x1xi1>
    %198 = vector.broadcast %197 : vector<64x1xi1> to vector<64x128xi1>
    %199 = vector.broadcast %cst_42 : f32 to vector<64x128xf32>
    %200 = arith.select %198, %194, %199 : vector<64x128xi1>, vector<64x128xf32>
    %c0_43 = arith.constant 0 : index
    %c0_44 = arith.constant 0 : index
    %201 = vector.load %arg11[%c0_43, %c0_44] : memref<64x128xf32, #tpu.memory_space<vmem>>, vector<64x128xf32>
    tpu.vector_store %arg11[%c0_43, %c0_44], %200 {strides = array<i32>} : memref<64x128xf32, #tpu.memory_space<vmem>>, vector<64x128xf32>,
    %c0_45 = arith.constant 0 : index
    %c0_46 = arith.constant 0 : index
    %202 = vector.load %arg12[%c0_45, %c0_46] : memref<8x32xf32, #tpu.memory_space<vmem>>, vector<8x32xf32>
    tpu.vector_store %arg12[%c0_45, %c0_46], %187 {strides = array<i32>} : memref<8x32xf32, #tpu.memory_space<vmem>>, vector<8x32xf32>,
    %c0_47 = arith.constant 0 : index
    %c0_48 = arith.constant 0 : index
    %203 = vector.load %arg13[%c0_47, %c0_48] : memref<8x32xf32, #tpu.memory_space<vmem>>, vector<8x32xf32>
    tpu.vector_store %arg13[%c0_47, %c0_48], %188 {strides = array<i32>} : memref<8x32xf32, #tpu.memory_space<vmem>>, vector<8x32xf32>,
    return
  }
}

</mosaic_0001>

<bundles_post_ra>
// kernel: vlstm_forward.1
= control target key start
LH: loop header
LB: loop body
LE: loop exit
PB: predicated region body
PF: predicated region fallthrough
CT: control target
= control target key end

     0   :  { %vm98_vm0 = vcmask 1041408   ;;  %vm73_vm1 = vcmask 15360   ;;  %v1743_v10 = vmov 0.0   ;;  %vm360_vm2 = vcmask 261120   ;;  %s1747_s22 = smov 32   ;;  %s2249_s2 = inlined_call_operand.vmem [shape: f32[2,16], index: 2, kind: input, shape index: {}]   ;;  %s2250_s0 = inlined_call_operand.vmem [shape: f32[64,2], index: 0, kind: input, shape index: {}]   ;;  %s2251_s4 = inlined_call_operand.vmem [shape: f32[16,128], index: 4, kind: input, shape index: {}]   ;;  %s2252_s5 = inlined_call_operand.vmem [shape: f32[32,128], index: 5, kind: input, shape index: {}]   ;;  %s2253_s9 = inlined_call_operand.vmem [shape: f32[8,32], index: 9, kind: input, shape index: {}, may-alias: {9,12}]   ;;  %s2254_s3 = inlined_call_operand.vmem [shape: f32[1,16], index: 3, kind: input, shape index: {}]   ;;  %s2255_s6 = inlined_call_operand.vmem [shape: f32[1,128], index: 6, kind: input, shape index: {}]   ;;  %s2256_s10 = inlined_call_operand.vmem [shape: f32[8,32], index: 10, kind: input, shape index: {}, may-alias: {10,13}]   ;;  %s2257_s1 = inlined_call_operand.vmem [shape: f32[64,1], index: 1, kind: input, shape index: {}]   ;;  %s2258_s7 = inlined_call_operand.vmem [shape: f32[32,128], index: 7, kind: input, shape index: {}]   ;;  %s2259_s13 = inlined_call_operand.vmem [shape: f32[8,32], index: 13, kind: output, shape index: {2}, may-alias: {10,13}]   ;;  %s2260_s12 = inlined_call_operand.vmem [shape: f32[8,32], index: 12, kind: output, shape index: {1}, may-alias: {9,12}]   ;;  %s2261_s8 = inlined_call_operand.vmem [shape: f32[1,128], index: 8, kind: input, shape index: {}]   ;;  %s2262_s11 = inlined_call_operand.vmem [shape: f32[64,128], index: 11, kind: output, shape index: {0}]  }
   0x1   :  { %v65_v0 = vld [vmem:[%s2249_s2] sm:$0x3]  ;;  %v42_v2 = vld [vmem:[%s2250_s0 + $0x8] sm:$0xff]  ;;  %v43_v3 = vld [vmem:[%s2250_s0 + $0x10] sm:$0xff]  ;;  %vm1744_vm3 = vmmov 0   ;;  %vm224_vm4 = vcmask 130048  }
   0x2   :  { %v41_v1 = vld [vmem:[%s2250_s0] sm:$0xff]  ;;  %1531 = vmatprep.subr.msk.mxu0 %vm98_vm0, %v65_v0  ;;  %1669 = vmatprep.subr.msk.mxu1 %vm98_vm0, %v65_v0  ;;  %v46_v5 = vld [vmem:[%s2250_s0 + $0x28] sm:$0xff]  ;;  %v47_v6 = vld [vmem:[%s2250_s0 + $0x30] sm:$0xff]  ;;  %v1745_v50 = vmov 0  }
   0x3   :  { %1533 = vmatprep.mubr.msk.f32.mxu0 %vm73_vm1, %v41_v1  ;;  %v45_v4 = vld [vmem:[%s2250_s0 + $0x20] sm:$0xff]  ;;  %1532 = vmatpush3.msk.msra.mxu0 %vm98_vm0, %v65_v0  ;;  %v216_v7 = vld [vmem:[%s2251_s4 + $0x8] sm:$0xff]  ;;  %v44_v8 = vld [vmem:[%s2250_s0 + $0x18] sm:$0xff] }
   0x4   :  { %1534 = vmatmul.mubr.msk.f32.vlgmr.msra.gmra.mxu0 %vm73_vm1, %v42_v2  ;;  %1670 = vmatpush3.msk.msra.mxu1 %vm98_vm0, %v65_v0  ;;  %v48_v9 = vld [vmem:[%s2250_s0 + $0x38] sm:$0xff]  ;;  %v1868_v12 = vld [vmem:[%s2252_s5 + $0x10] sm:$0xff]  ;;  %v215_v13 = vld [vmem:[%s2251_s4] sm:$0xff] }
   0x5   :  { %1536 = vmatprep.mubr.msk.f32.mxu0 %vm73_vm1, %v43_v3  ;;  %1539 = vmatprep.mubr.msk.f32.mxu1 %vm73_vm1, %v45_v4  ;;  %v1861_v11 = vld [vmem:[%s2252_s5 + $0x18] sm:$0xff]  ;;  %v1878_v14 = vld [vmem:[%s2252_s5 + $0x8] sm:$0xff]  ;;  %v1885_v15 = vld [vmem:[%s2252_s5] sm:$0xff] }
   0x6   :  { %1540 = vmatmul.mubr.msk.f32.vlgmr.msra.gmra.mxu1 %vm73_vm1, %v46_v5  ;;  %1545 = vmatprep.subr.mxu1 %v216_v7  ;;  %v1894_v16 = vld [vmem:[%s2253_s9] sm:$0xff] }
   0x7   :  { %1542 = vmatprep.mubr.msk.f32.mxu1 %vm73_vm1, %v47_v6  ;;  %1546 = vmatpush3.msra.mxu1 %v216_v7  ;;  %v1416_v17 = vld [vmem:[%s2254_s3] ss:$0 sm:$0xff] }
   0x8   :  { %1537 = vmatmul.mubr.msk.f32.gmra.mxu0 %vm73_vm1, %v44_v8  ;;  %1561 = vmatprep.subr.mxu0 %v1743_v10  ;;  %v1933_v44 = vld [vmem:[%s2255_s6] ss:$0 sm:$0xff]  ;;  %s1746_s6 = smov 64  }
   0x9   :  { %1562 = vmatpush3.msra.mxu0 %v1861_v11  ;;  %1547 = vmatprep.subr.mxu1 %v215_v13  ;;  %v359_v60 = vld [vmem:[%s2256_s10] sm:$0xff]  ;;  %s1748_s10 = smov 96  }
   0xa   :  { %1543 = vmatmul.mubr.msk.f32.gmra.mxu1 %vm73_vm1, %v48_v9  ;;  %1563 = vmatprep.subr.mxu0 %v1743_v10  ;;  %v49_v2 = vld [vmem:[%s2257_s1] sm:$0xff] }
   0xb   :  { %1564 = vmatpush3.msra.mxu0 %v1868_v12  ;;  %1548 = vmatpush3.msra.mxu1 %v215_v13  ;;  %vm57_vm5 = vcmp.gt.f32.partialorder %v49_v2, 0.5 }
   0xc   :  { %1565 = vmatprep.subr.mxu0 %v1743_v10  ;;  %1572 = vmatprep.subr.mxu1 %v1743_v10  ;;  %v463_v6 = vsel %vm57_vm5, 1, %v1745_v50 }
   0xd   :  { %1566 = vmatpush3.msra.mxu0 %v1878_v14  ;;  %1569 = vmatprep.mubr.msk.f32.mxu0 %vm1744_vm3, %v1743_v10 }
   0xe   :  { %1567 = vmatprep.subr.mxu0 %v1743_v10  ;;  %1677 = vset.pattern.permute.xlu1 %v1745_v50 }
   0xf   :  { %1568 = vmatpush3.msra.mxu0 %v1885_v15  ;;  %1678 = vset.pattern.permute.xlu0 %v1745_v50 }
  0x10   :  { %1570 = vmatmul.mubr.msk.f32.vlgmr.msra.gmra.mxu0 %vm360_vm2, %v1894_v16  ;;  %1583 = vmatprep.subr.mxu0 %v1743_v10 }
  0x11   :  { %1584 = vmatpush3.msra.mxu0 %v1861_v11  ;;  %1591 = vmatprep.mubr.msk.f32.mxu0 %vm1744_vm3, %v1743_v10 }
  0x12   :  { %1585 = vmatprep.subr.mxu0 %v1743_v10 }
  0x13   :  { %1586 = vmatpush3.msra.mxu0 %v1868_v12 }
  0x14   :  { %1587 = vmatprep.subr.mxu0 %v1743_v10 }
  0x15   :  { %1588 = vmatpush3.msra.mxu0 %v1878_v14 }
  0x16   :  { %1589 = vmatprep.subr.mxu0 %v1743_v10 }
  0x17   :  { %1590 = vmatpush3.msra.mxu0 %v1885_v15 }
  0x18   :  { %1605 = vmatprep.subr.mxu0 %v1743_v10 }
  0xc4   :  { %v1535_v18 = vpop.f32.mrf.mxu0 }
  0xc5   :  { %v174_v19 = vadd.f32 %v1535_v18, %v1416_v17 }
  0xc6   :  { %v168_v20 = vpop.f32.mrf.mxu0  ;;  %v1541_v21 = vpop.f32.mrf.mxu1 }
  0xc7   :  { %v169_v22 = vadd.f32 %v1416_v17, %v168_v20  ;;  %v208_v28 = vmax.f32 %v174_v19, 0.0  ;;  %v194_v33 = vadd.f32 %v1541_v21, %v1416_v17 }
  0xc8   :  { %v1538_v23 = vpop.f32.mrf.mxu0  ;;  %v188_v24 = vpop.f32.mrf.mxu1 }
  0xc9   :  { %v207_v25 = vmax.f32 %v169_v22, 0.0  ;;  %v184_v26 = vadd.f32 %v1538_v23, %v1416_v17  ;;  %v189_v27 = vadd.f32 %v1416_v17, %v188_v24  ;;  %v212_v38 = vmax.f32 %v194_v33, 0.0 }
  0xca   :  { %v178_v29 = vpop.f32.mrf.mxu0  ;;  %v1544_v30 = vpop.f32.mrf.mxu1 }
  0xcb   :  { %1549 = vmatprep.mubr.msk.f32.mxu1 %vm224_vm4, %v207_v25  ;;  %v179_v31 = vadd.f32 %v1416_v17, %v178_v29  ;;  %v210_v32 = vmax.f32 %v184_v26, 0.0  ;;  %v211_v36 = vmax.f32 %v189_v27, 0.0  ;;  %v204_v39 = vadd.f32 %v1544_v30, %v1416_v17  ;;  %v50_v27 = vld [vmem:[%s2257_s1 + $0x8] sm:$0xff] }
  0xcc   :  { %1550 = vmatmul.mubr.msk.f32.vlgmr.msra.gmra.mxu1 %vm224_vm4, %v208_v28  ;;  %v198_v34 = vpop.f32.mrf.mxu1  ;;  %vm58_vm7 = vcmp.gt.f32.partialorder %v50_v27, 0.5 }
  0xcd   :  { %v209_v35 = vmax.f32 %v179_v31, 0.0  ;;  %v199_v37 = vadd.f32 %v1416_v17, %v198_v34  ;;  %1573 = vmatpush3.msra.mxu1 %v1861_v11  ;;  %v214_v41 = vmax.f32 %v204_v39, 0.0  ;;  %v573_v29 = vsel %vm58_vm7, 1, %v1745_v50 }
  0xce   :  { %1574 = vmatprep.subr.mxu1 %v1743_v10 }
  0xcf   :  { %1552 = vmatprep.mubr.msk.f32.mxu1 %vm224_vm4, %v209_v35  ;;  %1575 = vmatpush3.msra.mxu1 %v1868_v12  ;;  %v213_v40 = vmax.f32 %v199_v37, 0.0 }
  0xd0   :  { %1553 = vmatmul.mubr.msk.f32.gmra.mxu1 %vm224_vm4, %v210_v32  ;;  %1576 = vmatprep.subr.mxu1 %v1743_v10  ;;  %v430_v42 = vpop.f32.mrf.mxu0 }
  0xd1   :  { %1555 = vmatprep.mubr.msk.f32.mxu1 %vm224_vm4, %v211_v36  ;;  %1577 = vmatpush3.msra.mxu1 %v1878_v14 }
  0xd2   :  { %1578 = vmatprep.subr.mxu1 %v1743_v10  ;;  %v1571_v43 = vpop.f32.mrf.mxu0 }
  0xd3   :  { %1579 = vmatpush3.msra.mxu1 %v1885_v15 }
  0xd4   :  { %1556 = vmatmul.mubr.msk.f32.gmra.mxu1 %vm224_vm4, %v212_v38  ;;  %1594 = vmatprep.subr.mxu1 %v1743_v10 }
  0xd5   :  { %1558 = vmatprep.mubr.msk.f32.mxu1 %vm224_vm4, %v213_v40 }
  0xd8   :  { %1559 = vmatmul.mubr.msk.f32.gmra.mxu1 %vm224_vm4, %v214_v41 }
  0xd9   :  { %1580 = vmatprep.mubr.msk.f32.mxu1 %vm1744_vm3, %v1743_v10 }
 0x18c   :  { %v1551_v45 = vpop.f32.mrf.mxu1 }
 0x18d   :  { %v1936_v46 = vadd.f32 %v1551_v45, %v1933_v44 }
 0x18e   :  { %v315_v47 = vpop.f32.mrf.mxu1 }
 0x18f   :  { %v316_v48 = vadd.f32 %v1933_v44, %v315_v47 }
 0x190   :  { %v1554_v51 = vpop.f32.mrf.mxu1 }
 0x191   :  { %v434_v49 = vadd.f32 %v430_v42, %v316_v48  ;;  %v1942_v52 = vadd.f32 %v1554_v51, %v1933_v44  ;;  %v51_v51 = vld [vmem:[%s2257_s1 + $0x10] sm:$0xff] }
 0x192   :  { %v325_v53 = vpop.f32.mrf.mxu1  ;;  %vm59_vm9 = vcmp.gt.f32.partialorder %v51_v51, 0.5 }
 0x193   :  { %1679 = vtanh.f32 %v434_v49  ;;  %v1945_v54 = vadd.f32 %v1933_v44, %v325_v53  ;;  %v1436_v63 = vmul.f32 -1.442695, %v434_v49 }
 0x194   :  { %v1557_v55 = vpop.f32.mrf.mxu1 }
 0x195   :  { %v1948_v56 = vadd.f32 %v1557_v55, %v1933_v44  ;;  %1681 = vpow2.f32 %v1436_v63  ;;  %v680_v55 = vsel %vm59_vm9, 1, %v1745_v50 }
 0x196   :  { %v335_v58 = vpop.f32.mrf.mxu1 }
 0x197   :  { %v1952_v59 = vadd.f32 %v1933_v44, %v335_v58 }
 0x198   :  { %v1560_v61 = vpop.f32.mrf.mxu1 }
 0x199   :  { %v1958_v62 = vadd.f32 %v1560_v61, %v1933_v44 }
 0x19a   :  { %v1989_v23 = vpop.f32.mrf.mxu1 }
 0x1a0   :  { %v1680_v57 = vpop.eup %1679 }
 0x1a1   :  { %448 = vrot.lane.b32.xlu0 %v1680_v57, %s1746_s6 }
 0x1a2   :  { %v1682_v0 = vpop.eup %1681 }
 0x1a3   :  { %v438_v1 = vadd.f32 1.0, %v1682_v0 }
 0x1a5   :  { %443 = vrot.lane.b32.xlu0 %v359_v60, %s1747_s22  ;;  %1683 = vrcp.f32 %v438_v1 }
 0x1b2   :  { %v1684_v3 = vpop.eup %1683 }
 0x213   :  { %v449_v4 = vpop.permute.xlu0 %448 }
 0x214   :  { %v451_v5 = vmul.f32 %v1684_v3, %v449_v4 }
 0x216   :  { %453 = vrot.lane.b32.xlu1 %v451_v5, %s1747_s22 }
 0x217   :  { %v444_v7 = vpop.permute.xlu0 %443 }
 0x218   :  { %v446_v8 = vmul.f32 %v1684_v3, %v444_v7 }
 0x21a   :  { %465 = vperm.xlu1 %1677, %v463_v6  }
 0x21e   :  { %468 = vrot.lane.b32.xlu1 %v1894_v16, %s1748_s10 }
 0x288   :  { %v454_v9 = vpop.permute.xlu1 %453 }
 0x289   :  { %v456_v13 = vadd.f32 %v454_v9, %v446_v8 }
 0x28b   :  { %1685 = vtanh.f32 %v456_v13 }
 0x295   :  { %v1969_v18 = vpop.permute.xlu1 %465 }
 0x296   :  { %vm467_vm6 = vcmp.eq.s32.totalorder %v1969_v18, 1 }
 0x297   :  { %v472_v36 = vsel %vm467_vm6, %v456_v13, %v444_v7 }
 0x298   :  { %v1686_v17 = vpop.eup %1685 }
 0x299   :  { %459 = vrot.lane.b32.xlu0 %v1686_v17, %s1746_s6  ;;  %v469_v20 = vpop.permute.xlu1 %468 }
 0x30b   :  { %v460_v19 = vpop.permute.xlu0 %459 }
 0x30c   :  { %v1971_v21 = vmul.f32 %v1684_v3, %v460_v19 }
 0x30e   :  { %v471_v16 = vsel %vm467_vm6, %v1971_v21, %v469_v20  ;;  %v52_v20 = vld [vmem:[%s2257_s1 + $0x18] sm:$0xff] }
 0x30f   :  { %474 = vrot.lane.b32.xlu0 %v471_v16, %s1747_s22  ;;  %vm60_vm11 = vcmp.gt.f32.partialorder %v52_v20, 0.5 }
 0x381   :  { %v475_v22 = vpop.permute.xlu0 %474 }
 0x382   :  { %1581 = vmatmul.mubr.msk.f32.vlgmr.msra.gmra.mxu1 %vm360_vm2, %v475_v22  ;;  %v787_v22 = vsel %vm60_vm11, 1, %v1745_v50 }
 0x383   :  { %1595 = vmatpush3.msra.mxu1 %v1861_v11  ;;  %1602 = vmatprep.mubr.msk.f32.mxu1 %vm1744_vm3, %v1743_v10 }
 0x384   :  { %1596 = vmatprep.subr.mxu1 %v1743_v10 }
 0x385   :  { %1597 = vmatpush3.msra.mxu1 %v1868_v12 }
 0x386   :  { %1598 = vmatprep.subr.mxu1 %v1743_v10 }
 0x387   :  { %1599 = vmatpush3.msra.mxu1 %v1878_v14 }
 0x388   :  { %1600 = vmatprep.subr.mxu1 %v1743_v10 }
 0x389   :  { %1601 = vmatpush3.msra.mxu1 %v1885_v15 }
 0x38a   :  { %1616 = vmatprep.subr.mxu1 %v1743_v10 }
 0x442   :  { %v544_v24 = vpop.f32.mrf.mxu1 }
 0x443   :  { %v548_v25 = vadd.f32 %v544_v24, %v1936_v46 }
 0x444   :  { %v1582_v26 = vpop.f32.mrf.mxu1 }
 0x445   :  { %1687 = vtanh.f32 %v548_v25  ;;  %v1438_v30 = vmul.f32 -1.442695, %v548_v25 }
 0x447   :  { %1689 = vpow2.f32 %v1438_v30 }
 0x452   :  { %v1688_v28 = vpop.eup %1687 }
 0x453   :  { %558 = vrot.lane.b32.xlu1 %v1688_v28, %s1746_s6 }
 0x454   :  { %v1690_v31 = vpop.eup %1689 }
 0x455   :  { %v552_v32 = vadd.f32 1.0, %v1690_v31 }
 0x457   :  { %575 = vperm.xlu1 %1677, %v573_v29   ;;  %1691 = vrcp.f32 %v552_v32 }
 0x464   :  { %v1692_v33 = vpop.eup %1691 }
 0x465   :  { %v556_v37 = vmul.f32 %v1692_v33, %v472_v36 }
 0x4c5   :  { %v559_v34 = vpop.permute.xlu1 %558 }
 0x4c6   :  { %v561_v35 = vmul.f32 %v1692_v33, %v559_v34 }
 0x4c8   :  { %563 = vrot.lane.b32.xlu0 %v561_v35, %s1747_s22 }
 0x4d2   :  { %v2001_v41 = vpop.permute.xlu1 %575 }
 0x4d3   :  { %vm577_vm8 = vcmp.eq.s32.totalorder %v2001_v41, 1 }
 0x53a   :  { %v564_v38 = vpop.permute.xlu0 %563 }
 0x53b   :  { %v566_v39 = vadd.f32 %v564_v38, %v556_v37 }
 0x53d   :  { %1693 = vtanh.f32 %v566_v39  ;;  %v579_v0 = vsel %vm577_vm8, %v566_v39, %v472_v36 }
 0x54a   :  { %v1694_v40 = vpop.eup %1693 }
 0x54b   :  { %569 = vrot.lane.b32.xlu0 %v1694_v40, %s1746_s6 }
 0x5bd   :  { %v570_v42 = vpop.permute.xlu0 %569 }
 0x5be   :  { %v2003_v43 = vmul.f32 %v1692_v33, %v570_v42 }
 0x5c0   :  { %v578_v45 = vsel %vm577_vm8, %v2003_v43, %v471_v16 }
 0x5c1   :  { %581 = vrot.lane.b32.xlu1 %v578_v45, %s1747_s22 }
 0x633   :  { %v582_v46 = vpop.permute.xlu1 %581 }
 0x634   :  { %1592 = vmatmul.mubr.msk.f32.vlgmr.msra.gmra.mxu0 %vm360_vm2, %v582_v46 }
 0x635   :  { %1606 = vmatpush3.msra.mxu0 %v1861_v11  ;;  %1613 = vmatprep.mubr.msk.f32.mxu0 %vm1744_vm3, %v1743_v10 }
 0x636   :  { %1607 = vmatprep.subr.mxu0 %v1743_v10 }
 0x637   :  { %1608 = vmatpush3.msra.mxu0 %v1868_v12 }
 0x638   :  { %1609 = vmatprep.subr.mxu0 %v1743_v10 }
 0x639   :  { %1610 = vmatpush3.msra.mxu0 %v1878_v14 }
 0x63a   :  { %1611 = vmatprep.subr.mxu0 %v1743_v10 }
 0x63b   :  { %1612 = vmatpush3.msra.mxu0 %v1885_v15 }
 0x63c   :  { %1627 = vmatprep.subr.mxu0 %v1743_v10 }
 0x6f4   :  { %v651_v47 = vpop.f32.mrf.mxu0 }
 0x6f5   :  { %v655_v48 = vadd.f32 %v651_v47, %v1945_v54 }
 0x6f6   :  { %v1593_v49 = vpop.f32.mrf.mxu0 }
 0x6f7   :  { %1695 = vtanh.f32 %v655_v48  ;;  %v1440_v57 = vmul.f32 -1.442695, %v655_v48 }
 0x6f9   :  { %1697 = vpow2.f32 %v1440_v57 }
 0x704   :  { %v1696_v53 = vpop.eup %1695 }
 0x705   :  { %665 = vrot.lane.b32.xlu0 %v1696_v53, %s1746_s6 }
 0x706   :  { %v1698_v58 = vpop.eup %1697 }
 0x707   :  { %v659_v60 = vadd.f32 1.0, %v1698_v58 }
 0x709   :  { %682 = vperm.xlu0 %1678, %v680_v55   ;;  %1699 = vrcp.f32 %v659_v60 }
 0x716   :  { %v1700_v61 = vpop.eup %1699 }
 0x717   :  { %v663_v1 = vmul.f32 %v1700_v61, %v579_v0 }
 0x777   :  { %v666_v54 = vpop.permute.xlu0 %665 }
 0x778   :  { %v668_v63 = vmul.f32 %v1700_v61, %v666_v54 }
 0x77a   :  { %670 = vrot.lane.b32.xlu1 %v668_v63, %s1747_s22 }
 0x784   :  { %v2031_v5 = vpop.permute.xlu0 %682 }
 0x785   :  { %vm684_vm10 = vcmp.eq.s32.totalorder %v2031_v5, 1 }
 0x7ec   :  { %v671_v2 = vpop.permute.xlu1 %670 }
 0x7ed   :  { %v673_v3 = vadd.f32 %v671_v2, %v663_v1 }
 0x7ef   :  { %1701 = vtanh.f32 %v673_v3  ;;  %v686_v29 = vsel %vm684_vm10, %v673_v3, %v579_v0 }
 0x7fc   :  { %v1702_v4 = vpop.eup %1701 }
 0x7fd   :  { %676 = vrot.lane.b32.xlu1 %v1702_v4, %s1746_s6 }
 0x86f   :  { %v677_v6 = vpop.permute.xlu1 %676 }
 0x870   :  { %v2033_v7 = vmul.f32 %v1700_v61, %v677_v6 }
 0x872   :  { %v685_v8 = vsel %vm684_vm10, %v2033_v7, %v578_v45  ;;  %v53_v45 = vld [vmem:[%s2257_s1 + $0x20] sm:$0xff] }
 0x873   :  { %688 = vrot.lane.b32.xlu1 %v685_v8, %s1747_s22  ;;  %vm61_vm13 = vcmp.gt.f32.partialorder %v53_v45, 0.5 }
 0x874   :  { %v894_v47 = vsel %vm61_vm13, 1, %v1745_v50 }
 0x8e5   :  { %v689_v9 = vpop.permute.xlu1 %688 }
 0x8e6   :  { %1603 = vmatmul.mubr.msk.f32.vlgmr.msra.gmra.mxu1 %vm360_vm2, %v689_v9 }
 0x8e7   :  { %1617 = vmatpush3.msra.mxu1 %v1861_v11  ;;  %1624 = vmatprep.mubr.msk.f32.mxu1 %vm1744_vm3, %v1743_v10 }
 0x8e8   :  { %1618 = vmatprep.subr.mxu1 %v1743_v10 }
 0x8e9   :  { %1619 = vmatpush3.msra.mxu1 %v1868_v12 }
 0x8ea   :  { %1620 = vmatprep.subr.mxu1 %v1743_v10 }
 0x8eb   :  { %1621 = vmatpush3.msra.mxu1 %v1878_v14 }
 0x8ec   :  { %1622 = vmatprep.subr.mxu1 %v1743_v10 }
 0x8ed   :  { %1623 = vmatpush3.msra.mxu1 %v1885_v15 }
 0x8ee   :  { %1638 = vmatprep.subr.mxu1 %v1743_v10 }
 0x9a6   :  { %v758_v13 = vpop.f32.mrf.mxu1 }
 0x9a7   :  { %v762_v17 = vadd.f32 %v758_v13, %v1942_v52 }
 0x9a8   :  { %v1604_v19 = vpop.f32.mrf.mxu1 }
 0x9a9   :  { %1703 = vtanh.f32 %v762_v17  ;;  %v1442_v24 = vmul.f32 -1.442695, %v762_v17 }
 0x9ab   :  { %1705 = vpow2.f32 %v1442_v24 }
 0x9b6   :  { %v1704_v16 = vpop.eup %1703 }
 0x9b7   :  { %772 = vrot.lane.b32.xlu0 %v1704_v16, %s1746_s6 }
 0x9b8   :  { %v1706_v25 = vpop.eup %1705 }
 0x9b9   :  { %v766_v26 = vadd.f32 1.0, %v1706_v25 }
 0x9bb   :  { %789 = vperm.xlu0 %1678, %v787_v22   ;;  %1707 = vrcp.f32 %v766_v26 }
 0x9c8   :  { %v1708_v27 = vpop.eup %1707 }
 0x9c9   :  { %v770_v30 = vmul.f32 %v1708_v27, %v686_v29 }
 0xa29   :  { %v773_v52 = vpop.permute.xlu0 %772 }
 0xa2a   :  { %v775_v28 = vmul.f32 %v1708_v27, %v773_v52 }
 0xa2c   :  { %777 = vrot.lane.b32.xlu1 %v775_v28, %s1747_s22 }
 0xa36   :  { %v2061_v34 = vpop.permute.xlu0 %789 }
 0xa37   :  { %vm791_vm12 = vcmp.eq.s32.totalorder %v2061_v34, 1 }
 0xa9e   :  { %v778_v31 = vpop.permute.xlu1 %777 }
 0xa9f   :  { %v780_v32 = vadd.f32 %v778_v31, %v770_v30 }
 0xaa1   :  { %1709 = vtanh.f32 %v780_v32  ;;  %v793_v57 = vsel %vm791_vm12, %v780_v32, %v686_v29  ;;  %v346_v29 = vadd.f32 %v1933_v44, %v1989_v23 }
 0xaae   :  { %v1710_v33 = vpop.eup %1709 }
 0xaaf   :  { %783 = vrot.lane.b32.xlu1 %v1710_v33, %s1746_s6  ;;  %v55_v33 = vld [vmem:[%s2257_s1 + $0x30] sm:$0xff] }
 0xab0   :  { %vm63_vm1 = vcmp.gt.f32.partialorder %v55_v33, 0.5 }
 0xb21   :  { %v784_v35 = vpop.permute.xlu1 %783 }
 0xb22   :  { %v2063_v36 = vmul.f32 %v1708_v27, %v784_v35 }
 0xb24   :  { %v792_v37 = vsel %vm791_vm12, %v2063_v36, %v685_v8 }
 0xb25   :  { %795 = vrot.lane.b32.xlu0 %v792_v37, %s1747_s22 }
 0xb97   :  { %v796_v38 = vpop.permute.xlu0 %795 }
 0xb98   :  { %1614 = vmatmul.mubr.msk.f32.vlgmr.msra.gmra.mxu0 %vm360_vm2, %v796_v38 }
 0xb99   :  { %1628 = vmatpush3.msra.mxu0 %v1861_v11  ;;  %1635 = vmatprep.mubr.msk.f32.mxu0 %vm1744_vm3, %v1743_v10 }
 0xb9a   :  { %1629 = vmatprep.subr.mxu0 %v1743_v10 }
 0xb9b   :  { %1630 = vmatpush3.msra.mxu0 %v1868_v12 }
 0xb9c   :  { %1631 = vmatprep.subr.mxu0 %v1743_v10 }
 0xb9d   :  { %1632 = vmatpush3.msra.mxu0 %v1878_v14 }
 0xb9e   :  { %1633 = vmatprep.subr.mxu0 %v1743_v10 }
 0xb9f   :  { %1634 = vmatpush3.msra.mxu0 %v1885_v15 }
 0xc58   :  { %v865_v39 = vpop.f32.mrf.mxu0 }
 0xc59   :  { %v869_v40 = vadd.f32 %v865_v39, %v1952_v59 }
 0xc5a   :  { %v1615_v42 = vpop.f32.mrf.mxu0 }
 0xc5b   :  { %1711 = vtanh.f32 %v869_v40  ;;  %v1444_v48 = vmul.f32 -1.442695, %v869_v40 }
 0xc5d   :  { %1713 = vpow2.f32 %v1444_v48 }
 0xc68   :  { %v1712_v46 = vpop.eup %1711 }
 0xc69   :  { %879 = vrot.lane.b32.xlu1 %v1712_v46, %s1746_s6 }
 0xc6a   :  { %v1714_v49 = vpop.eup %1713 }
 0xc6b   :  { %v873_v51 = vadd.f32 1.0, %v1714_v49 }
 0xc6d   :  { %896 = vperm.xlu1 %1677, %v894_v47   ;;  %1715 = vrcp.f32 %v873_v51 }
 0xc7a   :  { %v1716_v53 = vpop.eup %1715 }
 0xc7b   :  { %v877_v58 = vmul.f32 %v1716_v53, %v793_v57 }
 0xcdb   :  { %v880_v59 = vpop.permute.xlu1 %879 }
 0xcdc   :  { %v882_v55 = vmul.f32 %v1716_v53, %v880_v59 }
 0xcde   :  { %884 = vrot.lane.b32.xlu0 %v882_v55, %s1747_s22 }
 0xce8   :  { %v2090_v63 = vpop.permute.xlu1 %896 }
 0xce9   :  { %vm898_vm14 = vcmp.eq.s32.totalorder %v2090_v63, 1 }
 0xd50   :  { %v885_v60 = vpop.permute.xlu0 %884 }
 0xd51   :  { %v887_v61 = vadd.f32 %v885_v60, %v877_v58 }
 0xd53   :  { %1717 = vtanh.f32 %v887_v61  ;;  %v900_v19 = vsel %vm898_vm14, %v887_v61, %v793_v57 }
 0xd60   :  { %v1718_v54 = vpop.eup %1717 }
 0xd61   :  { %890 = vrot.lane.b32.xlu0 %v1718_v54, %s1746_s6 }
 0xdd3   :  { %v891_v0 = vpop.permute.xlu0 %890 }
 0xdd4   :  { %v2092_v1 = vmul.f32 %v1716_v53, %v891_v0 }
 0xdd6   :  { %v899_v2 = vsel %vm898_vm14, %v2092_v1, %v792_v37  ;;  %v1108_v37 = vsel %vm63_vm1, 1, %v1745_v50 }
 0xdd7   :  { %902 = vrot.lane.b32.xlu1 %v899_v2, %s1747_s22 }
 0xe49   :  { %v903_v3 = vpop.permute.xlu1 %902 }
 0xe4a   :  { %1625 = vmatmul.mubr.msk.f32.vlgmr.msra.gmra.mxu1 %vm360_vm2, %v903_v3 }
 0xe4b   :  { %1639 = vmatpush3.msra.mxu1 %v1861_v11  ;;  %1646 = vmatprep.mubr.msk.f32.mxu1 %vm1744_vm3, %v1743_v10  ;;  %v54_v11 = vld [vmem:[%s2257_s1 + $0x28] sm:$0xff] }
 0xe4c   :  { %1640 = vmatprep.subr.mxu1 %v1743_v10  ;;  %vm62_vm15 = vcmp.gt.f32.partialorder %v54_v11, 0.5 }
 0xe4d   :  { %1641 = vmatpush3.msra.mxu1 %v1868_v12  ;;  %v1001_v12 = vsel %vm62_vm15, 1, %v1745_v50 }
 0xe4e   :  { %1642 = vmatprep.subr.mxu1 %v1743_v10 }
 0xe4f   :  { %1643 = vmatpush3.msra.mxu1 %v1878_v14 }
 0xe50   :  { %1644 = vmatprep.subr.mxu1 %v1743_v10 }
 0xe51   :  { %1645 = vmatpush3.msra.mxu1 %v1885_v15 }
 0xf0a   :  { %v972_v4 = vpop.f32.mrf.mxu1 }
 0xf0b   :  { %v976_v6 = vadd.f32 %v972_v4, %v1948_v56 }
 0xf0c   :  { %v1626_v8 = vpop.f32.mrf.mxu1 }
 0xf0d   :  { %1719 = vtanh.f32 %v976_v6  ;;  %v1446_v14 = vmul.f32 -1.442695, %v976_v6 }
 0xf0f   :  { %1721 = vpow2.f32 %v1446_v14 }
 0xf1a   :  { %v1720_v9 = vpop.eup %1719 }
 0xf1b   :  { %986 = vrot.lane.b32.xlu0 %v1720_v9, %s1746_s6  ;;  %v1225_v9 = vld [vmem:[%s2258_s7 + $0x18] sm:$0xff] }
 0xf1c   :  { %v1722_v10 = vpop.eup %1721  ;;  %1649 = vmatprep.subr.mxu0 %v1225_v9 }
 0xf1d   :  { %v980_v15 = vadd.f32 1.0, %v1722_v10 }
 0xf1f   :  { %1003 = vperm.xlu0 %1678, %v1001_v12   ;;  %1723 = vrcp.f32 %v980_v15  ;;  %v1222_v15 = vld [vmem:[%s2258_s7] sm:$0xff] }
 0xf2c   :  { %v1724_v13 = vpop.eup %1723 }
 0xf2d   :  { %v984_v20 = vmul.f32 %v1724_v13, %v900_v19 }
 0xf8d   :  { %v987_v56 = vpop.permute.xlu0 %986 }
 0xf8e   :  { %v989_v17 = vmul.f32 %v1724_v13, %v987_v56 }
 0xf90   :  { %991 = vrot.lane.b32.xlu1 %v989_v17, %s1747_s22 }
 0xf9a   :  { %v2119_v25 = vpop.permute.xlu0 %1003 }
 0xf9b   :  { %vm1005_vm0 = vcmp.eq.s32.totalorder %v2119_v25, 1 }
0x1002   :  { %v992_v16 = vpop.permute.xlu1 %991 }
0x1003   :  { %v994_v22 = vadd.f32 %v992_v16, %v984_v20 }
0x1005   :  { %1725 = vtanh.f32 %v994_v22  ;;  %v1007_v45 = vsel %vm1005_vm0, %v994_v22, %v900_v19 }
0x1012   :  { %v1726_v24 = vpop.eup %1725 }
0x1013   :  { %997 = vrot.lane.b32.xlu1 %v1726_v24, %s1746_s6 }
0x1085   :  { %v998_v26 = vpop.permute.xlu1 %997 }
0x1086   :  { %v2121_v27 = vmul.f32 %v1724_v13, %v998_v26 }
0x1088   :  { %v1006_v52 = vsel %vm1005_vm0, %v2121_v27, %v899_v2 }
0x1089   :  { %1009 = vrot.lane.b32.xlu0 %v1006_v52, %s1747_s22 }
0x10fb   :  { %v1010_v28 = vpop.permute.xlu0 %1009 }
0x10fc   :  { %1636 = vmatmul.mubr.msk.f32.vlgmr.msra.gmra.mxu0 %vm360_vm2, %v1010_v28 }
0x10fd   :  { %1650 = vmatpush3.msra.mxu0 %v1225_v9 }
0x11bc   :  { %v1079_v30 = vpop.f32.mrf.mxu0 }
0x11bd   :  { %v1083_v31 = vadd.f32 %v1079_v30, %v346_v29  ;;  %v1451_v30 = vld [vmem:[%s2261_s8] ss:$0 sm:$0xff] }
0x11be   :  { %v1637_v32 = vpop.f32.mrf.mxu0 }
0x11bf   :  { %1727 = vtanh.f32 %v1083_v31  ;;  %v1448_v38 = vmul.f32 -1.442695, %v1083_v31 }
0x11c1   :  { %1729 = vpow2.f32 %v1448_v38 }
0x11cc   :  { %v1728_v35 = vpop.eup %1727 }
0x11cd   :  { %1093 = vrot.lane.b32.xlu1 %v1728_v35, %s1746_s6 }
0x11ce   :  { %v1730_v39 = vpop.eup %1729 }
0x11cf   :  { %v1087_v40 = vadd.f32 1.0, %v1730_v39 }
0x11d1   :  { %1110 = vperm.xlu1 %1677, %v1108_v37   ;;  %1731 = vrcp.f32 %v1087_v40 }
0x11de   :  { %v1732_v44 = vpop.eup %1731 }
0x11df   :  { %v1091_v46 = vmul.f32 %v1732_v44, %v1007_v45 }
0x123f   :  { %v1094_v23 = vpop.permute.xlu1 %1093 }
0x1240   :  { %v1096_v42 = vmul.f32 %v1732_v44, %v1094_v23 }
0x1242   :  { %1098 = vrot.lane.b32.xlu0 %v1096_v42, %s1747_s22 }
0x124c   :  { %v2140_v51 = vpop.permute.xlu1 %1110 }
0x124d   :  { %vm1112_vm3 = vcmp.eq.s32.totalorder %v2140_v51, 1 }
0x12b4   :  { %v1099_v47 = vpop.permute.xlu0 %1098 }
0x12b5   :  { %v1101_v48 = vadd.f32 %v1099_v47, %v1091_v46 }
0x12b7   :  { %1733 = vtanh.f32 %v1101_v48 }
0x12c4   :  { %v1734_v49 = vpop.eup %1733 }
0x12c5   :  { %1104 = vrot.lane.b32.xlu0 %v1734_v49, %s1746_s6 }
0x1337   :  { %v1105_v53 = vpop.permute.xlu0 %1104 }
0x1338   :  { %v1107_v59 = vmul.f32 %v1732_v44, %v1105_v53 }
0x133a   :  { %v2145_v55 = vsel %vm1112_vm3, %v1107_v59, %v1006_v52 }
0x133b   :  { %1116 = vrot.lane.b32.xlu1 %v2145_v55, %s1747_s22 }
0x13ad   :  { %v1117_v57 = vpop.permute.xlu1 %1116 }
0x13ae   :  { %1647 = vmatmul.mubr.msk.f32.vlgmr.msra.gmra.mxu1 %vm360_vm2, %v1117_v57 }
0x146e   :  { %v1186_v58 = vpop.f32.mrf.mxu1 }
0x146f   :  { %v1190_v60 = vadd.f32 %v1186_v58, %v1958_v62  ;;  %v56_v62 = vld [vmem:[%s2257_s1 + $0x38] sm:$0xff] }
0x1470   :  { %v1648_v61 = vpop.f32.mrf.mxu1  ;;  %vm64_vm4 = vcmp.gt.f32.partialorder %v56_v62, 0.5 }
0x1471   :  { %1735 = vtanh.f32 %v1190_v60  ;;  %v1450_v0 = vmul.f32 -1.442695, %v1190_v60  ;;  %v1215_v11 = vsel %vm64_vm4, 1, %v1745_v50  ;;  %v1223_v50 = vld [vmem:[%s2258_s7 + $0x8] sm:$0xff] }
0x1473   :  { %1737 = vpow2.f32 %v1450_v0 }
0x147e   :  { %v1736_v54 = vpop.eup %1735 }
0x147f   :  { %1200 = vrot.lane.b32.xlu0 %v1736_v54, %s1746_s6 }
0x1480   :  { %v1738_v2 = vpop.eup %1737 }
0x1481   :  { %v1194_v3 = vadd.f32 1.0, %v1738_v2 }
0x1483   :  { %1739 = vrcp.f32 %v1194_v3 }
0x1490   :  { %v1740_v4 = vpop.eup %1739 }
0x14f1   :  { %v1201_v6 = vpop.permute.xlu0 %1200 }
0x14f2   :  { %v1203_v8 = vmul.f32 %v1740_v4, %v1201_v6 }
0x14f4   :  { %1205 = vrot.lane.b32.xlu1 %v1203_v8, %s1747_s22 }
0x14f8   :  { %1241 = vrot.lane.b32.xlu1 %v1971_v21, %s1747_s22  ;;  %v1224_v21 = vld [vmem:[%s2258_s7 + $0x10] sm:$0xff] }
0x14f9   :  { %1651 = vmatprep.subr.mxu0 %v1224_v21 }
0x14fa   :  { %1652 = vmatpush3.msra.mxu0 %v1224_v21 }
0x14fb   :  { %1653 = vmatprep.subr.mxu0 %v1223_v50 }
0x14fc   :  { %1245 = vrot.lane.b32.xlu1 %v2033_v7, %s1747_s22  ;;  %v1114_v7 = vsel %vm1112_vm3, %v1101_v48, %v1007_v45  ;;  %1654 = vmatpush3.msra.mxu0 %v1223_v50 }
0x14fd   :  { %1655 = vmatprep.subr.mxu0 %v1222_v15 }
0x14fe   :  { %1656 = vmatpush3.msra.mxu0 %v1222_v15 }
0x1500   :  { %1249 = vrot.lane.b32.xlu1 %v2092_v1, %s1747_s22  ;;  %v1198_v1 = vmul.f32 %v1740_v4, %v1114_v7 }
0x1504   :  { %1253 = vrot.lane.b32.xlu1 %v1107_v59, %s1747_s22 }
0x1508   :  { %1217 = vperm.xlu1 %1677, %v1215_v11  }
0x1566   :  { %v1206_v12 = vpop.permute.xlu1 %1205 }
0x1567   :  { %v1208_v14 = vadd.f32 %v1206_v12, %v1198_v1 }
0x1569   :  { %1741 = vtanh.f32 %v1208_v14 }
0x156a   :  { %v1242_v10 = vpop.permute.xlu1 %1241 }
0x156b   :  { %1657 = vmatprep.mubr.msk.f32.mxu0 %vm360_vm2, %v1242_v10 }
0x156e   :  { %v1246_v13 = vpop.permute.xlu1 %1245 }
0x1572   :  { %v1250_v17 = vpop.permute.xlu1 %1249 }
0x1576   :  { %v1742_v56 = vpop.eup %1741  ;;  %v1254_v19 = vpop.permute.xlu1 %1253 }
0x1577   :  { %1211 = vrot.lane.b32.xlu0 %v1742_v56, %s1746_s6 }
0x157b   :  { %1243 = vrot.lane.b32.xlu0 %v2003_v43, %s1747_s22 }
0x157f   :  { %1247 = vrot.lane.b32.xlu0 %v2063_v36, %s1747_s22 }
0x1583   :  { %v1218_v20 = vpop.permute.xlu1 %1217  ;;  %1251 = vrot.lane.b32.xlu0 %v2121_v27, %s1747_s22 }
0x1584   :  { %vm1219_vm5 = vcmp.eq.s32.totalorder %v1218_v20, 1 }
0x1585   :  { %v1221_v16 = vsel %vm1219_vm5, %v1208_v14, %v1114_v7 }
0x1586   :  { %1400 = vrot.lane.b32.xlu1 %v1221_v16, %s1748_s10 }
0x15e9   :  { %v1212_v22 = vpop.permute.xlu0 %1211 }
0x15ea   :  { %v1214_v24 = vmul.f32 %v1740_v4, %v1212_v22 }
0x15ec   :  { %1255 = vrot.lane.b32.xlu0 %v1214_v24, %s1747_s22  ;;  %v1220_v43 = vsel %vm1219_vm5, %v1214_v24, %v2145_v55 }
0x15ed   :  { %v1244_v26 = vpop.permute.xlu0 %1243 }
0x15ee   :  { %1658 = vmatmul.mubr.msk.f32.vlgmr.msra.gmra.mxu0 %vm360_vm2, %v1244_v26 }
0x15ef   :  { %1660 = vmatprep.mubr.msk.f32.mxu0 %vm360_vm2, %v1246_v13 }
0x15f0   :  { %1395 = vrot.lane.b32.xlu0 %v1220_v43, %s1747_s22 }
0x15f1   :  { %v1248_v36 = vpop.permute.xlu0 %1247 }
0x15f2   :  { %1661 = vmatmul.mubr.msk.f32.gmra.mxu0 %vm360_vm2, %v1248_v36 }
0x15f3   :  { %1663 = vmatprep.mubr.msk.f32.mxu0 %vm360_vm2, %v1250_v17 }
0x15f5   :  { %v1252_v27 = vpop.permute.xlu0 %1251 }
0x15f6   :  { %1664 = vmatmul.mubr.msk.f32.gmra.mxu0 %vm360_vm2, %v1252_v27 }
0x15f7   :  { %1666 = vmatprep.mubr.msk.f32.mxu0 %vm360_vm2, %v1254_v19 }
0x15f8   :  { %v1401_v52 = vpop.permute.xlu1 %1400 }
0x15f9   :  { %1403 = vst.msk [vmem:[%s2259_s13] sm:$0xff] %vm360_vm2, %v1401_v52 }
0x165e   :  { %v1256_v28 = vpop.permute.xlu0 %1255 }
0x165f   :  { %1667 = vmatmul.mubr.msk.f32.gmra.mxu0 %vm360_vm2, %v1256_v28 }
0x1662   :  { %v1396_v29 = vpop.permute.xlu0 %1395 }
0x1663   :  { %1398 = vst.msk [vmem:[%s2260_s12] sm:$0xff] %vm360_vm2, %v1396_v29 }
0x16ae   :  { %v1659_v31 = vpop.f32.mrf.mxu0 }
0x16af   :  { %v1345_v32 = vadd.f32 %v1659_v31, %v1451_v30 }
0x16b0   :  { %v1339_v33 = vpop.f32.mrf.mxu0 }
0x16b1   :  { %v1379_v35 = vsel %vm577_vm8, %v1345_v32, 0.0  ;;  %v1340_v37 = vadd.f32 %v1451_v30, %v1339_v33 }
0x16b2   :  { %1387 = vst [vmem:[%s2262_s11 + $0x8] sm:$0xff] %v1379_v35  ;;  %v1662_v38 = vpop.f32.mrf.mxu0 }
0x16b3   :  { %v1378_v39 = vsel %vm467_vm6, %v1340_v37, 0.0  ;;  %v1355_v40 = vadd.f32 %v1662_v38, %v1451_v30 }
0x16b4   :  { %1386 = vst [vmem:[%s2262_s11] sm:$0xff] %v1378_v39  ;;  %v1349_v44 = vpop.f32.mrf.mxu0 }
0x16b5   :  { %v1381_v23 = vsel %vm791_vm12, %v1355_v40, 0.0  ;;  %v1350_v41 = vadd.f32 %v1451_v30, %v1349_v44 }
0x16b6   :  { %1389 = vst [vmem:[%s2262_s11 + $0x18] sm:$0xff] %v1381_v23  ;;  %v1665_v42 = vpop.f32.mrf.mxu0 }
0x16b7   :  { %v1380_v45 = vsel %vm684_vm10, %v1350_v41, 0.0  ;;  %v1365_v18 = vadd.f32 %v1665_v42, %v1451_v30 }
0x16b8   :  { %1388 = vst [vmem:[%s2262_s11 + $0x10] sm:$0xff] %v1380_v45  ;;  %v1359_v46 = vpop.f32.mrf.mxu0 }
0x16b9   :  { %v1383_v47 = vsel %vm1005_vm0, %v1365_v18, 0.0  ;;  %v1360_v34 = vadd.f32 %v1451_v30, %v1359_v46 }
0x16ba   :  { %1391 = vst [vmem:[%s2262_s11 + $0x28] sm:$0xff] %v1383_v47 }
0x16bb   :  { %v1382_v48 = vsel %vm898_vm14, %v1360_v34, 0.0 }
0x16bc   :  { %1390 = vst [vmem:[%s2262_s11 + $0x20] sm:$0xff] %v1382_v48 }
0x171f   :  { %v1668_v5 = vpop.f32.mrf.mxu0 }
0x1720   :  { %v1375_v49 = vadd.f32 %v1668_v5, %v1451_v30 }
0x1721   :  { %v1369_v53 = vpop.f32.mrf.mxu0 }
0x1722   :  { %v1385_v59 = vsel %vm1219_vm5, %v1375_v49, 0.0  ;;  %v1370_v55 = vadd.f32 %v1451_v30, %v1369_v53 }
0x1723   :  { %1393 = vst [vmem:[%s2262_s11 + $0x38] sm:$0xff] %v1385_v59 }
0x1724   :  { %v1384_v25 = vsel %vm1112_vm3, %v1370_v55, 0.0 }
0x1725   :  { %1392 = vst [vmem:[%s2262_s11 + $0x30] sm:$0xff] %v1384_v25 }

</bundles_post_ra>
